<compile_context>
chip_gen: v6e
topology: v6e:2x2x1
jax: 0.10.0
libtpu: 0.0.40
codegen_flags: <defaults>
</compile_context>

<pallas_src>
import math

import jax
import jax.numpy as jnp
from jax import lax
from jax.experimental import pallas as pl
from jax.experimental.pallas import tpu as pltpu

LN_EPS = 1e-12  # cfg.layer_norm_eps


def _round_up(x, m):
    return ((x + m - 1) // m) * m


def _cdiv(a, b):
    return (a + b - 1) // b


def _layernorm(x, gamma, beta, eps=LN_EPS):
    # two-pass LayerNorm (same form as the reference / nn.LayerNorm)
    mu = jnp.mean(x, axis=-1, keepdims=True)
    xc = x - mu
    var = jnp.mean(xc * xc, axis=-1, keepdims=True)
    return xc * lax.rsqrt(var + eps) * gamma + beta


def position_encoding(L, D):
    position = jnp.arange(L, dtype=jnp.float32)[:, None]
    div_term = jnp.exp(jnp.arange(0, D, 2, dtype=jnp.float32) * (-math.log(10000.0) / D))
    ang = position * div_term                                       # (L, D//2)
    pe = jnp.zeros((L, D), jnp.float32)
    pe = pe.at[:, 0::2].set(jnp.sin(ang))
    pe = pe.at[:, 1::2].set(jnp.cos(ang))
    return pe


def _embedding_kernel(wid_ref, tid_ref, pid_ref, img_ref,
                      wemb_ref, temb_ref, pe_ref, w_ref, pw_ref, ph_ref,
                      out_ref):
    # stacked LN / bias params:
    #   pw_ref: (2, Dw) = [ln1_gamma, ln1_beta]
    #   ph_ref: (7, Dh) = [linear_b, ln2_g, ln2_b, lni_g, lni_b, lnf_g, lnf_b]
    tm = out_ref.shape[0]

    # ---- in-kernel embedding "gathers": exact row selection via one-hot @ table (MXU) ----
    # TODO(synk): for production-size vocab (~30k rows) replace the word one-hot with a
    # scalar-prefetch-driven DMA gather; one-hot stays fine for the tok / PE tables.
    def select_rows(idx_ref, table_ref):
        rows = table_ref.shape[0]
        idx = idx_ref[...]                                           # (tm, 1) int32
        iota = lax.broadcasted_iota(jnp.int32, (tm, rows), 1)
        oh = jnp.where(idx == iota, 1.0, 0.0).astype(table_ref.dtype)
        return jnp.dot(oh, table_ref[...], preferred_element_type=jnp.float32)

    x = select_rows(wid_ref, wemb_ref)                               # (tm, Dw) word emb, f32
    tok = select_rows(tid_ref, temb_ref)                             # (tm, Dh) token-type emb
    pe = select_rows(pid_ref, pe_ref)                                # (tm, Dh) positional enc

    # ---- word_fc: LN(Dw) -> Dropout(identity) -> Linear(Dw->Dh) -> ReLU -> LN(Dh) ----
    xn = _layernorm(x, pw_ref[0:1, :], pw_ref[1:2, :]).astype(w_ref.dtype)
    h = jnp.dot(xn, w_ref[...], preferred_element_type=jnp.float32) + ph_ref[0:1, :]
    h = jnp.maximum(h, 0.0)                                          # ReLU
    acc = _layernorm(h, ph_ref[1:2, :], ph_ref[2:3, :])              # words embeddings

    # ---- img LayerNorm, token-type emb, positional encoding: accumulate in place ----
    acc = acc + _layernorm(img_ref[...].astype(jnp.float32), ph_ref[3:4, :], ph_ref[4:5, :])
    acc = acc + tok
    acc = acc + pe

    # ---- final LayerNorm + writeback ----
    out_ref[...] = _layernorm(acc, ph_ref[5:6, :], ph_ref[6:7, :]).astype(out_ref.dtype)


def multimodal_embedding(input_ids, img_feats, token_type_ids, params, *,
                         block_rows=1024,                  # target rows per grid step
                         vmem_budget_bytes=24 * 1024 * 1024,  # v7x-safe; raise on 128-MiB v5e/v6e
                         min_grid_steps=8,                 # keep grid long enough for v7x megacore
                         table_dtype=jnp.bfloat16,         # storage / MXU dtype for tables+weight
                         out_dtype=jnp.bfloat16,           # halve writeback by default
                         single_buffer_consts=False,       # pl.Buffered(1) on constant blocks
                         vmem_limit_bytes=None):
    N, L = input_ids.shape
    Dw = params["word_emb"].shape[1]
    Dh = params["linear_w"].shape[1]
    M0 = N * L

    # ---- small constant slabs; table rows padded to 128 so the one-hot selects are aligned ----
    def pad_rows(t, mult=128):
        rp = _round_up(t.shape[0], mult)
        return jnp.pad(t, ((0, rp - t.shape[0]), (0, 0))) if rp != t.shape[0] else t

    wemb = pad_rows(params["word_emb"].astype(table_dtype))          # (Vp, Dw)
    temb = pad_rows(params["tok_emb"].astype(table_dtype))           # (Tp, Dh)
    pe = pad_rows(position_encoding(L, Dh).astype(table_dtype))      # (Lp, Dh)
    w = params["linear_w"].astype(table_dtype)                       # (Dw, Dh)
    pw = jnp.stack([params["ln1_g"], params["ln1_b"]], 0).astype(jnp.float32)      # (2, Dw)
    ph = jnp.stack([params["linear_b"],
                    params["ln2_g"], params["ln2_b"],
                    params["lni_g"], params["lni_b"],
                    params["lnf_g"], params["lnf_b"]], 0).astype(jnp.float32)      # (7, Dh)
    Vp, Tp, Lp = wemb.shape[0], temb.shape[0], pe.shape[0]

    # ---- tiny per-row int32 index streams instead of gathered (M, D) slabs ----
    wids = input_ids.reshape(M0, 1).astype(jnp.int32)
    tids = token_type_ids.reshape(M0, 1).astype(jnp.int32)
    pids = jnp.tile(jnp.arange(L, dtype=jnp.int32), N).reshape(M0, 1)
    img = img_feats.reshape(M0, Dh)

    # ---- row tile: as large as the VMEM budget allows (incl. in-kernel f32 temps), but
    #      capped so the parallel grid keeps >= min_grid_steps blocks (v7x: 2 TensorCores) ----
    bt = jnp.dtype(table_dtype).itemsize
    bo = jnp.dtype(out_dtype).itemsize
    bi = jnp.dtype(img.dtype).itemsize
    const_bytes = 2 * (bt * (Vp * Dw + (Tp + Lp) * Dh + Dw * Dh) + 4 * (2 * Dw + 7 * Dh))
    io_per_row = 2 * (3 * 4 + bi * Dh + bo * Dh)                     # double-buffered row streams
    f32_per_row = 4 * (2 * Dw + 6 * Dh) + bt * (Vp + Tp + Lp)        # live temps + one-hots
    budget = vmem_limit_bytes if vmem_limit_bytes is not None else vmem_budget_bytes
    max_rows = max(8, (budget - const_bytes) // (io_per_row + f32_per_row))
    cap = max(8, _round_up(_cdiv(M0, min_grid_steps), 8))
    tm = max(8, (min(block_rows, max_rows, cap) // 8) * 8)

    # only a (< tm)-row tail pad so tm | M; no full-array interior pads.
    M = _round_up(M0, tm)
    if M != M0:
        # TODO(synk): a masked remainder block would avoid even this small tail pad.
        padr = ((0, M - M0), (0, 0))
        wids = jnp.pad(wids, padr)
        tids = jnp.pad(tids, padr)
        pids = jnp.pad(pids, padr)
        img = jnp.pad(img, padr)

    # ---- BlockSpecs ----
    def cspec(shape):  # constant-index (resident) blocks
        if single_buffer_consts:
            return pl.BlockSpec(shape, lambda i: (0, 0), pipeline_mode=pl.Buffered(1))
        return pl.BlockSpec(shape, lambda i: (0, 0))

    ids_spec = pl.BlockSpec((tm, 1), lambda i: (i, 0))
    row_h = pl.BlockSpec((tm, Dh), lambda i: (i, 0))

    cp_kwargs = dict(dimension_semantics=("parallel",))   # disjoint output blocks -> megacore-safe
    if vmem_limit_bytes is not None:
        cp_kwargs["vmem_limit_bytes"] = vmem_limit_bytes

    out = pl.pallas_call(
        _embedding_kernel,
        out_shape=jax.ShapeDtypeStruct((M, Dh), out_dtype),
        grid_spec=pltpu.PrefetchScalarGridSpec(
            num_scalar_prefetch=0,
            grid=(M // tm,),
            in_specs=[ids_spec, ids_spec, ids_spec, row_h,
                      cspec((Vp, Dw)), cspec((Tp, Dh)), cspec((Lp, Dh)),
                      cspec((Dw, Dh)), cspec((2, Dw)), cspec((7, Dh))],
            out_specs=row_h,
        ),
        compiler_params=pltpu.CompilerParams(**cp_kwargs),
    )(wids, tids, pids, img, wemb, temb, pe, w, pw, ph)

    return out[:M0].reshape(N, L, Dh)


def reference(input_ids, img_feats, token_type_ids, params):
    N, L = input_ids.shape
    Dh = params["linear_w"].shape[1]
    x = params["word_emb"][input_ids]
    x = _layernorm(x, params["ln1_g"], params["ln1_b"])
    x = jnp.maximum(x @ params["linear_w"] + params["linear_b"], 0.0)
    words = _layernorm(x, params["ln2_g"], params["ln2_b"])
    img = _layernorm(img_feats, params["lni_g"], params["lni_b"])
    tok = params["tok_emb"][token_type_ids]
    emb = words + img + tok + position_encoding(L, Dh)[None]
    return _layernorm(emb, params["lnf_g"], params["lnf_b"])


if __name__ == "__main__":
    # small config consistent with the module (feature dims kept lane-dense multiples of 128)
    vocab_size, type_vocab_size = 50, 2
    word_vec_size, hidden_size = 128, 256
    N, L = 2, 10

    key = jax.random.PRNGKey(0)
    ks = jax.random.split(key, 16)

    word_emb = 0.02 * jax.random.normal(ks[0], (vocab_size, word_vec_size), jnp.float32)
    word_emb = word_emb.at[0].set(0.0)  # padding_idx=0
    tok_emb = 0.02 * jax.random.normal(ks[1], (type_vocab_size, hidden_size), jnp.float32)
    linear_w = jax.random.normal(ks[2], (word_vec_size, hidden_size), jnp.float32) / math.sqrt(word_vec_size)
    linear_b = 0.01 * jax.random.normal(ks[3], (hidden_size,), jnp.float32)

    def ln(kg, kb, d):
        return (1.0 + 0.1 * jax.random.normal(kg, (d,), jnp.float32),
                0.05 * jax.random.normal(kb, (d,), jnp.float32))

    ln1_g, ln1_b = ln(ks[4], ks[5], word_vec_size)
    ln2_g, ln2_b = ln(ks[6], ks[7], hidden_size)
    lni_g, lni_b = ln(ks[8], ks[9], hidden_size)
    lnf_g, lnf_b = ln(ks[10], ks[11], hidden_size)

    params = dict(word_emb=word_emb, tok_emb=tok_emb,
                  linear_w=linear_w, linear_b=linear_b,
                  ln1_g=ln1_g, ln1_b=ln1_b, ln2_g=ln2_g, ln2_b=ln2_b,
                  lni_g=lni_g, lni_b=lni_b, lnf_g=lnf_g, lnf_b=lnf_b)

    input_ids = jax.random.randint(ks[12], (N, L), 0, vocab_size, dtype=jnp.int32)
    token_type_ids = jax.random.randint(ks[13], (N, L), 0, type_vocab_size, dtype=jnp.int32)
    img_feats = jax.random.normal(ks[14], (N, L, hidden_size), jnp.float32)

    # fast default path: bf16 tables / weight / output (HBM-traffic-optimized)
    out_fast = multimodal_embedding(input_ids, img_feats, token_type_ids, params)
    out_fast = jax.block_until_ready(out_fast)

    # full-f32 path for a tight numerical check against the pure-JAX reference
    out_f32 = multimodal_embedding(input_ids, img_feats, token_type_ids, params,
                                   table_dtype=jnp.float32, out_dtype=jnp.float32)
    out_f32 = jax.block_until_ready(out_f32)

    ref = reference(input_ids, img_feats, token_type_ids, params)
    assert out_fast.shape == (N, L, hidden_size)
    err32 = float(jnp.max(jnp.abs(out_f32 - ref)))
    assert jnp.allclose(out_f32, ref, atol=1e-4, rtol=1e-4), err32
    errbf = float(jnp.max(jnp.abs(out_fast.astype(jnp.float32) - ref)))
    assert jnp.allclose(out_fast.astype(jnp.float32), ref, atol=1e-1, rtol=1e-1), errbf
    print("KERNEL_OK")
</pallas_src>

<mosaic_0001>
module attributes {stable_mosaic.version = 11 : i64} {
  func.func @_embedding_kernel(%arg0: i32, %arg1: memref<8x1xi32, #tpu.memory_space<vmem>>, %arg2: memref<8x1xi32, #tpu.memory_space<vmem>>, %arg3: memref<8x1xi32, #tpu.memory_space<vmem>>, %arg4: memref<8x256xf32, #tpu.memory_space<vmem>>, %arg5: memref<128x128xbf16, #tpu.memory_space<vmem>>, %arg6: memref<128x256xbf16, #tpu.memory_space<vmem>>, %arg7: memref<128x256xbf16, #tpu.memory_space<vmem>>, %arg8: memref<128x256xbf16, #tpu.memory_space<vmem>>, %arg9: memref<2x128xf32, #tpu.memory_space<vmem>>, %arg10: memref<7x256xf32, #tpu.memory_space<vmem>>, %arg11: memref<8x256xbf16, #tpu.memory_space<vmem>>) attributes {dimension_semantics = [#tpu.dimension_semantics<parallel>], iteration_bounds = array<i64: 3>, scalar_prefetch = 0 : i64, scratch_operands = 0 : i64, tpu.core_type = #tpu.core_type<tc>, window_params = [{transform_indices = @transform_0, window_bounds = array<i64: 8, 1>}, {transform_indices = @transform_1, window_bounds = array<i64: 8, 1>}, {transform_indices = @transform_2, window_bounds = array<i64: 8, 1>}, {transform_indices = @transform_3, window_bounds = array<i64: 8, 256>}, {pipeline_mode = #tpu.pipeline_mode<synchronous>, transform_indices = @transform_4, window_bounds = array<i64: 128, 128>}, {pipeline_mode = #tpu.pipeline_mode<synchronous>, transform_indices = @transform_5, window_bounds = array<i64: 128, 256>}, {pipeline_mode = #tpu.pipeline_mode<synchronous>, transform_indices = @transform_6, window_bounds = array<i64: 128, 256>}, {pipeline_mode = #tpu.pipeline_mode<synchronous>, transform_indices = @transform_7, window_bounds = array<i64: 128, 256>}, {pipeline_mode = #tpu.pipeline_mode<synchronous>, transform_indices = @transform_8, window_bounds = array<i64: 2, 128>}, {pipeline_mode = #tpu.pipeline_mode<synchronous>, transform_indices = @transform_9, window_bounds = array<i64: 7, 256>}, {transform_indices = @transform_10, window_bounds = array<i64: 8, 256>}]} {
    %c0 = arith.constant 0 : index
    %c0_0 = arith.constant 0 : index
    %0 = vector.load %arg1[%c0, %c0_0] : memref<8x1xi32, #tpu.memory_space<vmem>>, vector<8x1xi32>
    %1 = tpu.iota {dimensions = array<i32: 1>} : vector<8x128xi32>
    %2 = vector.broadcast %0 : vector<8x1xi32> to vector<8x128xi32>
    %3 = arith.cmpi eq, %2, %1 : vector<8x128xi32>
    %cst = arith.constant 1.000000e+00 : f32
    %cst_1 = arith.constant 0.000000e+00 : f32
    %4 = vector.broadcast %cst : f32 to vector<8x128xf32>
    %5 = vector.broadcast %cst_1 : f32 to vector<8x128xf32>
    %6 = arith.select %3, %4, %5 : vector<8x128xi1>, vector<8x128xf32>
    %7 = arith.truncf %6 : vector<8x128xf32> to vector<8x128xbf16>
    %c0_2 = arith.constant 0 : index
    %c0_3 = arith.constant 0 : index
    %8 = vector.load %arg5[%c0_2, %c0_3] : memref<128x128xbf16, #tpu.memory_space<vmem>>, vector<128x128xbf16>
    %cst_4 = arith.constant dense<0.000000e+00> : vector<8x128xf32>
    %9 = tpu.matmul %7, %8, %cst_4 {dimension_numbers = #tpu.dot_dimension_numbers<[1], [0], [0], [1], [0, 0, 1, 1], [], []>} : vector<8x128xbf16>, vector<128x128xbf16>, vector<8x128xf32> -> vector<8x128xf32>
    %c0_5 = arith.constant 0 : index
    %c0_6 = arith.constant 0 : index
    %10 = vector.load %arg2[%c0_5, %c0_6] : memref<8x1xi32, #tpu.memory_space<vmem>>, vector<8x1xi32>
    %11 = tpu.iota {dimensions = array<i32: 1>} : vector<8x128xi32>
    %12 = vector.broadcast %10 : vector<8x1xi32> to vector<8x128xi32>
    %13 = arith.cmpi eq, %12, %11 : vector<8x128xi32>
    %cst_7 = arith.constant 1.000000e+00 : f32
    %cst_8 = arith.constant 0.000000e+00 : f32
    %14 = vector.broadcast %cst_7 : f32 to vector<8x128xf32>
    %15 = vector.broadcast %cst_8 : f32 to vector<8x128xf32>
    %16 = arith.select %13, %14, %15 : vector<8x128xi1>, vector<8x128xf32>
    %17 = arith.truncf %16 : vector<8x128xf32> to vector<8x128xbf16>
    %c0_9 = arith.constant 0 : index
    %c0_10 = arith.constant 0 : index
    %18 = vector.load %arg6[%c0_9, %c0_10] : memref<128x256xbf16, #tpu.memory_space<vmem>>, vector<128x256xbf16>
    %cst_11 = arith.constant dense<0.000000e+00> : vector<8x256xf32>
    %19 = tpu.matmul %17, %18, %cst_11 {dimension_numbers = #tpu.dot_dimension_numbers<[1], [0], [0], [1], [0, 0, 1, 1], [], []>} : vector<8x128xbf16>, vector<128x256xbf16>, vector<8x256xf32> -> vector<8x256xf32>
    %c0_12 = arith.constant 0 : index
    %c0_13 = arith.constant 0 : index
    %20 = vector.load %arg3[%c0_12, %c0_13] : memref<8x1xi32, #tpu.memory_space<vmem>>, vector<8x1xi32>
    %21 = tpu.iota {dimensions = array<i32: 1>} : vector<8x128xi32>
    %22 = vector.broadcast %20 : vector<8x1xi32> to vector<8x128xi32>
    %23 = arith.cmpi eq, %22, %21 : vector<8x128xi32>
    %cst_14 = arith.constant 1.000000e+00 : f32
    %cst_15 = arith.constant 0.000000e+00 : f32
    %24 = vector.broadcast %cst_14 : f32 to vector<8x128xf32>
    %25 = vector.broadcast %cst_15 : f32 to vector<8x128xf32>
    %26 = arith.select %23, %24, %25 : vector<8x128xi1>, vector<8x128xf32>
    %27 = arith.truncf %26 : vector<8x128xf32> to vector<8x128xbf16>
    %c0_16 = arith.constant 0 : index
    %c0_17 = arith.constant 0 : index
    %28 = vector.load %arg7[%c0_16, %c0_17] : memref<128x256xbf16, #tpu.memory_space<vmem>>, vector<128x256xbf16>
    %cst_18 = arith.constant dense<0.000000e+00> : vector<8x256xf32>
    %29 = tpu.matmul %27, %28, %cst_18 {dimension_numbers = #tpu.dot_dimension_numbers<[1], [0], [0], [1], [0, 0, 1, 1], [], []>} : vector<8x128xbf16>, vector<128x256xbf16>, vector<8x256xf32> -> vector<8x256xf32>
    %c0_19 = arith.constant 0 : index
    %c0_20 = arith.constant 0 : index
    %30 = vector.load %arg9[%c0_19, %c0_20] : memref<2x128xf32, #tpu.memory_space<vmem>>, vector<1x128xf32>
    %c1 = arith.constant 1 : index
    %c0_21 = arith.constant 0 : index
    %31 = vector.load %arg9[%c1, %c0_21] : memref<2x128xf32, #tpu.memory_space<vmem>>, vector<1x128xf32>
    %cst_22 = arith.constant dense<0.000000e+00> : vector<8xf32>
    %32 = vector.multi_reduction <add>, %9, %cst_22 [1] : vector<8x128xf32> to vector<8xf32>
    %33 = vector.shape_cast %32 : vector<8xf32> to vector<8x1xf32>
    %cst_23 = arith.constant 1.280000e+02 : f32
    %34 = vector.broadcast %cst_23 : f32 to vector<8x1xf32>
    %35 = arith.divf %33, %34 : vector<8x1xf32>
    %36 = vector.broadcast %35 : vector<8x1xf32> to vector<8x128xf32>
    %37 = arith.subf %9, %36 : vector<8x128xf32>
    %38 = arith.mulf %37, %37 : vector<8x128xf32>
    %cst_24 = arith.constant dense<0.000000e+00> : vector<8xf32>
    %39 = vector.multi_reduction <add>, %38, %cst_24 [1] : vector<8x128xf32> to vector<8xf32>
    %40 = vector.shape_cast %39 : vector<8xf32> to vector<8x1xf32>
    %cst_25 = arith.constant 1.280000e+02 : f32
    %41 = vector.broadcast %cst_25 : f32 to vector<8x1xf32>
    %42 = arith.divf %40, %41 : vector<8x1xf32>
    %cst_26 = arith.constant 9.99999996E-13 : f32
    %43 = vector.broadcast %cst_26 : f32 to vector<8x1xf32>
    %44 = arith.addf %42, %43 : vector<8x1xf32>
    %45 = math.rsqrt %44 : vector<8x1xf32>
    %46 = vector.broadcast %45 : vector<8x1xf32> to vector<8x128xf32>
    %47 = arith.mulf %37, %46 : vector<8x128xf32>
    %48 = vector.broadcast %30 : vector<1x128xf32> to vector<8x128xf32>
    %49 = arith.mulf %47, %48 : vector<8x128xf32>
    %50 = vector.broadcast %31 : vector<1x128xf32> to vector<8x128xf32>
    %51 = arith.addf %49, %50 : vector<8x128xf32>
    %52 = arith.truncf %51 : vector<8x128xf32> to vector<8x128xbf16>
    %c0_27 = arith.constant 0 : index
    %c0_28 = arith.constant 0 : index
    %53 = vector.load %arg8[%c0_27, %c0_28] : memref<128x256xbf16, #tpu.memory_space<vmem>>, vector<128x256xbf16>
    %cst_29 = arith.constant dense<0.000000e+00> : vector<8x256xf32>
    %54 = tpu.matmul %52, %53, %cst_29 {dimension_numbers = #tpu.dot_dimension_numbers<[1], [0], [0], [1], [0, 0, 1, 1], [], []>} : vector<8x128xbf16>, vector<128x256xbf16>, vector<8x256xf32> -> vector<8x256xf32>
    %c0_30 = arith.constant 0 : index
    %c0_31 = arith.constant 0 : index
    %55 = vector.load %arg10[%c0_30, %c0_31] : memref<7x256xf32, #tpu.memory_space<vmem>>, vector<1x256xf32>
    %56 = vector.broadcast %55 : vector<1x256xf32> to vector<8x256xf32>
    %57 = arith.addf %54, %56 : vector<8x256xf32>
    %cst_32 = arith.constant 0.000000e+00 : f32
    %58 = vector.broadcast %cst_32 : f32 to vector<8x256xf32>
    %59 = arith.maximumf %57, %58 : vector<8x256xf32>
    %c1_33 = arith.constant 1 : index
    %c0_34 = arith.constant 0 : index
    %60 = vector.load %arg10[%c1_33, %c0_34] : memref<7x256xf32, #tpu.memory_space<vmem>>, vector<1x256xf32>
    %c2 = arith.constant 2 : index
    %c0_35 = arith.constant 0 : index
    %61 = vector.load %arg10[%c2, %c0_35] : memref<7x256xf32, #tpu.memory_space<vmem>>, vector<1x256xf32>
    %cst_36 = arith.constant dense<0.000000e+00> : vector<8xf32>
    %62 = vector.multi_reduction <add>, %59, %cst_36 [1] : vector<8x256xf32> to vector<8xf32>
    %63 = vector.shape_cast %62 : vector<8xf32> to vector<8x1xf32>
    %cst_37 = arith.constant 2.560000e+02 : f32
    %64 = vector.broadcast %cst_37 : f32 to vector<8x1xf32>
    %65 = arith.divf %63, %64 : vector<8x1xf32>
    %66 = vector.broadcast %65 : vector<8x1xf32> to vector<8x256xf32>
    %67 = arith.subf %59, %66 : vector<8x256xf32>
    %68 = arith.mulf %67, %67 : vector<8x256xf32>
    %cst_38 = arith.constant dense<0.000000e+00> : vector<8xf32>
    %69 = vector.multi_reduction <add>, %68, %cst_38 [1] : vector<8x256xf32> to vector<8xf32>
    %70 = vector.shape_cast %69 : vector<8xf32> to vector<8x1xf32>
    %cst_39 = arith.constant 2.560000e+02 : f32
    %71 = vector.broadcast %cst_39 : f32 to vector<8x1xf32>
    %72 = arith.divf %70, %71 : vector<8x1xf32>
    %cst_40 = arith.constant 9.99999996E-13 : f32
    %73 = vector.broadcast %cst_40 : f32 to vector<8x1xf32>
    %74 = arith.addf %72, %73 : vector<8x1xf32>
    %75 = math.rsqrt %74 : vector<8x1xf32>
    %76 = vector.broadcast %75 : vector<8x1xf32> to vector<8x256xf32>
    %77 = arith.mulf %67, %76 : vector<8x256xf32>
    %78 = vector.broadcast %60 : vector<1x256xf32> to vector<8x256xf32>
    %79 = arith.mulf %77, %78 : vector<8x256xf32>
    %80 = vector.broadcast %61 : vector<1x256xf32> to vector<8x256xf32>
    %81 = arith.addf %79, %80 : vector<8x256xf32>
    %c0_41 = arith.constant 0 : index
    %c0_42 = arith.constant 0 : index
    %82 = vector.load %arg4[%c0_41, %c0_42] : memref<8x256xf32, #tpu.memory_space<vmem>>, vector<8x256xf32>
    %c3 = arith.constant 3 : index
    %c0_43 = arith.constant 0 : index
    %83 = vector.load %arg10[%c3, %c0_43] : memref<7x256xf32, #tpu.memory_space<vmem>>, vector<1x256xf32>
    %c4 = arith.constant 4 : index
    %c0_44 = arith.constant 0 : index
    %84 = vector.load %arg10[%c4, %c0_44] : memref<7x256xf32, #tpu.memory_space<vmem>>, vector<1x256xf32>
    %cst_45 = arith.constant dense<0.000000e+00> : vector<8xf32>
    %85 = vector.multi_reduction <add>, %82, %cst_45 [1] : vector<8x256xf32> to vector<8xf32>
    %86 = vector.shape_cast %85 : vector<8xf32> to vector<8x1xf32>
    %cst_46 = arith.constant 2.560000e+02 : f32
    %87 = vector.broadcast %cst_46 : f32 to vector<8x1xf32>
    %88 = arith.divf %86, %87 : vector<8x1xf32>
    %89 = vector.broadcast %88 : vector<8x1xf32> to vector<8x256xf32>
    %90 = arith.subf %82, %89 : vector<8x256xf32>
    %91 = arith.mulf %90, %90 : vector<8x256xf32>
    %cst_47 = arith.constant dense<0.000000e+00> : vector<8xf32>
    %92 = vector.multi_reduction <add>, %91, %cst_47 [1] : vector<8x256xf32> to vector<8xf32>
    %93 = vector.shape_cast %92 : vector<8xf32> to vector<8x1xf32>
    %cst_48 = arith.constant 2.560000e+02 : f32
    %94 = vector.broadcast %cst_48 : f32 to vector<8x1xf32>
    %95 = arith.divf %93, %94 : vector<8x1xf32>
    %cst_49 = arith.constant 9.99999996E-13 : f32
    %96 = vector.broadcast %cst_49 : f32 to vector<8x1xf32>
    %97 = arith.addf %95, %96 : vector<8x1xf32>
    %98 = math.rsqrt %97 : vector<8x1xf32>
    %99 = vector.broadcast %98 : vector<8x1xf32> to vector<8x256xf32>
    %100 = arith.mulf %90, %99 : vector<8x256xf32>
    %101 = vector.broadcast %83 : vector<1x256xf32> to vector<8x256xf32>
    %102 = arith.mulf %100, %101 : vector<8x256xf32>
    %103 = vector.broadcast %84 : vector<1x256xf32> to vector<8x256xf32>
    %104 = arith.addf %102, %103 : vector<8x256xf32>
    %105 = arith.addf %81, %104 : vector<8x256xf32>
    %106 = arith.addf %105, %19 : vector<8x256xf32>
    %107 = arith.addf %106, %29 : vector<8x256xf32>
    %c5 = arith.constant 5 : index
    %c0_50 = arith.constant 0 : index
    %108 = vector.load %arg10[%c5, %c0_50] : memref<7x256xf32, #tpu.memory_space<vmem>>, vector<1x256xf32>
    %c6 = arith.constant 6 : index
    %c0_51 = arith.constant 0 : index
    %109 = vector.load %arg10[%c6, %c0_51] : memref<7x256xf32, #tpu.memory_space<vmem>>, vector<1x256xf32>
    %cst_52 = arith.constant dense<0.000000e+00> : vector<8xf32>
    %110 = vector.multi_reduction <add>, %107, %cst_52 [1] : vector<8x256xf32> to vector<8xf32>
    %111 = vector.shape_cast %110 : vector<8xf32> to vector<8x1xf32>
    %cst_53 = arith.constant 2.560000e+02 : f32
    %112 = vector.broadcast %cst_53 : f32 to vector<8x1xf32>
    %113 = arith.divf %111, %112 : vector<8x1xf32>
    %114 = vector.broadcast %113 : vector<8x1xf32> to vector<8x256xf32>
    %115 = arith.subf %107, %114 : vector<8x256xf32>
    %116 = arith.mulf %115, %115 : vector<8x256xf32>
    %cst_54 = arith.constant dense<0.000000e+00> : vector<8xf32>
    %117 = vector.multi_reduction <add>, %116, %cst_54 [1] : vector<8x256xf32> to vector<8xf32>
    %118 = vector.shape_cast %117 : vector<8xf32> to vector<8x1xf32>
    %cst_55 = arith.constant 2.560000e+02 : f32
    %119 = vector.broadcast %cst_55 : f32 to vector<8x1xf32>
    %120 = arith.divf %118, %119 : vector<8x1xf32>
    %cst_56 = arith.constant 9.99999996E-13 : f32
    %121 = vector.broadcast %cst_56 : f32 to vector<8x1xf32>
    %122 = arith.addf %120, %121 : vector<8x1xf32>
    %123 = math.rsqrt %122 : vector<8x1xf32>
    %124 = vector.broadcast %123 : vector<8x1xf32> to vector<8x256xf32>
    %125 = arith.mulf %115, %124 : vector<8x256xf32>
    %126 = vector.broadcast %108 : vector<1x256xf32> to vector<8x256xf32>
    %127 = arith.mulf %125, %126 : vector<8x256xf32>
    %128 = vector.broadcast %109 : vector<1x256xf32> to vector<8x256xf32>
    %129 = arith.addf %127, %128 : vector<8x256xf32>
    %130 = arith.truncf %129 : vector<8x256xf32> to vector<8x256xbf16>
    %c0_57 = arith.constant 0 : index
    %c0_58 = arith.constant 0 : index
    %131 = vector.load %arg11[%c0_57, %c0_58] : memref<8x256xbf16, #tpu.memory_space<vmem>>, vector<8x256xbf16>
    tpu.vector_store %arg11[%c0_57, %c0_58], %130 {strides = array<i32>} : memref<8x256xbf16, #tpu.memory_space<vmem>>, vector<8x256xbf16>,
    return
  }
  func.func @transform_0(%arg0: i32) -> (i32, i32) {
    %c0_i32 = arith.constant 0 : i32
    %c0_i32_0 = arith.constant 0 : i32
    return %arg0, %c0_i32 : i32, i32
  }
  func.func @transform_1(%arg0: i32) -> (i32, i32) {
    %c0_i32 = arith.constant 0 : i32
    %c0_i32_0 = arith.constant 0 : i32
    return %arg0, %c0_i32 : i32, i32
  }
  func.func @transform_2(%arg0: i32) -> (i32, i32) {
    %c0_i32 = arith.constant 0 : i32
    %c0_i32_0 = arith.constant 0 : i32
    return %arg0, %c0_i32 : i32, i32
  }
  func.func @transform_3(%arg0: i32) -> (i32, i32) {
    %c0_i32 = arith.constant 0 : i32
    %c0_i32_0 = arith.constant 0 : i32
    return %arg0, %c0_i32 : i32, i32
  }
  func.func @transform_4(%arg0: i32) -> (i32, i32) {
    %c0_i32 = arith.constant 0 : i32
    %c0_i32_0 = arith.constant 0 : i32
    %c0_i32_1 = arith.constant 0 : i32
    return %c0_i32, %c0_i32_0 : i32, i32
  }
  func.func @transform_5(%arg0: i32) -> (i32, i32) {
    %c0_i32 = arith.constant 0 : i32
    %c0_i32_0 = arith.constant 0 : i32
    %c0_i32_1 = arith.constant 0 : i32
    return %c0_i32, %c0_i32_0 : i32, i32
  }
  func.func @transform_6(%arg0: i32) -> (i32, i32) {
    %c0_i32 = arith.constant 0 : i32
    %c0_i32_0 = arith.constant 0 : i32
    %c0_i32_1 = arith.constant 0 : i32
    return %c0_i32, %c0_i32_0 : i32, i32
  }
  func.func @transform_7(%arg0: i32) -> (i32, i32) {
    %c0_i32 = arith.constant 0 : i32
    %c0_i32_0 = arith.constant 0 : i32
    %c0_i32_1 = arith.constant 0 : i32
    return %c0_i32, %c0_i32_0 : i32, i32
  }
  func.func @transform_8(%arg0: i32) -> (i32, i32) {
    %c0_i32 = arith.constant 0 : i32
    %c0_i32_0 = arith.constant 0 : i32
    %c0_i32_1 = arith.constant 0 : i32
    return %c0_i32, %c0_i32_0 : i32, i32
  }
  func.func @transform_9(%arg0: i32) -> (i32, i32) {
    %c0_i32 = arith.constant 0 : i32
    %c0_i32_0 = arith.constant 0 : i32
    %c0_i32_1 = arith.constant 0 : i32
    return %c0_i32, %c0_i32_0 : i32, i32
  }
  func.func @transform_10(%arg0: i32) -> (i32, i32) {
    %c0_i32 = arith.constant 0 : i32
    %c0_i32_0 = arith.constant 0 : i32
    return %arg0, %c0_i32 : i32, i32
  }
}

</mosaic_0001>

<bundles_post_ra>
// kernel: tpu_custom_call.1
= control target key start
LH: loop header
LB: loop body
LE: loop exit
PB: predicated region body
PF: predicated region fallthrough
CT: control target
= control target key end

     0   :  { %s2196_s0 = inlined_call_operand.vmem [shape: s32[24,1], index: 0, kind: input, shape index: {}]   ;;  %s2197_s1 = inlined_call_operand.vmem [shape: s32[24,1], index: 1, kind: input, shape index: {}]   ;;  %s2198_s2 = inlined_call_operand.vmem [shape: s32[24,1], index: 2, kind: input, shape index: {}]   ;;  %s2199_s3 = inlined_call_operand.hbm [shape: f32[24,256], index: 3, kind: input, shape index: {}]   ;;  %s2200_s4 = inlined_call_operand.vmem [shape: bf16[128,128], index: 4, kind: input, shape index: {}]   ;;  %s2201_s5 = inlined_call_operand.hbm [shape: bf16[128,256], index: 5, kind: input, shape index: {}]   ;;  %s2202_s6 = inlined_call_operand.hbm [shape: bf16[128,256], index: 6, kind: input, shape index: {}]   ;;  %s2203_s7 = inlined_call_operand.hbm [shape: bf16[128,256], index: 7, kind: input, shape index: {}]   ;;  %s2204_s8 = inlined_call_operand.vmem [shape: f32[2,128], index: 8, kind: input, shape index: {}]   ;;  %s2205_s9 = inlined_call_operand.vmem [shape: f32[7,256], index: 9, kind: input, shape index: {}]   ;;  %s2206_s10 = inlined_call_operand.hbm [shape: bf16[24,256], index: 10, kind: output, shape index: {}]  }
   0x1   :  { %2212 = sst [smem:[#allocation17_spill]] %s2201_s5 }
   0x2   :  { %2213 = sst [smem:[#allocation18_spill]] %s2202_s6 }
   0x3   :  { %2214 = sst [smem:[#allocation19_spill]] %s2203_s7 }
   0x4   :  { %15 = vsyncpa [#allocation3], 0 }
   0x5   :  { %17 = vsyncpa [#allocation3 + $0x1], 0 }
   0x6   :  { %18 = vsyncpa [#allocation6], 0 }
   0x7   :  { %19 = vsyncpa [#allocation9], 0 }
   0x8   :  { %20 = vsyncpa [#allocation4], 0 }
   0x9   :  { %22 = vsyncpa [#allocation4 + $0x1], 0  ;;  %s1900_s13 = smov 0   ;;  %s1902_s14 = smov 0  }
   0xa   :  { %s1904_s15 = smov 0   ;;  %s1906_s16 = smov 0  }
   0xb LB: > { %2215 = sst [smem:[#allocation15_spill]] %s1828_s15  ;;  %s1921_s17 = sadd.s32 4294967295, %s1832_s16   ;;  %s1832_s16 = sphi %s1906_s16, %s2239_s16   ;;  %s1828_s15 = sphi %s1904_s15, %s2236_s15   ;;  %s1824_s14 = sphi %s1902_s14, %s2238_s14   ;;  %s1820_s13 = sphi %s1900_s13, %s2237_s13  }
   0xc   : > { %s1355_s18 = sadd.s32 4294967294, %s1832_s16   ;;  %p126_p0 = scmp.ne.s32.totalorder %s1824_s14, %s1820_s13 }
   0xd   : > { %p2207_p1 = scmp.eq.s32.totalorder %s1921_s17, 0  ;;  %p282_p3 = scmp.eq.s32.totalorder %s1355_s18, 2 }
   0xe   : > { %p1356_p5 = scmp.ge.s32.totalorder %s1832_s16, 1  ;;  %p289_p7 = scmp.lt.s32.totalorder %s1832_s16, 4 }
   0xf   : > { %p1930_p4 = por %p2207_p1, %p126_p0  ;;  %p1935_p6 = por %p282_p3, %p126_p0 }
  0x10   : > { %p1940_p8 = pnand %p1356_p5, %p289_p7  ;;  %s1834_s22 = smov [#allocation5]  }
  0x11   : > { %s2216_s19 = scalar_select %p1930_p4, 1, 0 }
  0x12   : > { %s2217_s20 = scalar_select %p1935_p6, 1, 0 }
  0x13   : > { %s2218_s21 = scalar_select %p1940_p8, 1, 0 }
  0x14   : > { %s304_s23 = sshll.u32 %s1834_s22, 4  ;;  %p1497_p9 = pneg %p1940_p8  ;;  %s305_s23 = int_to_ptr.vmem [resolvable:$true] %s304_s23 }
  0x15   : > { %s1835_s25 = smov [#allocation7]   ;;  %s1836_s27 = smov [#allocation8]  }
  0x16   : > { %p1948_p10 = pnand %p1497_p9, %p2207_p1  ;;  %s317_s26 = sshll.u32 %s1835_s25, 4  ;;  %s318_s26 = int_to_ptr.vmem [resolvable:$true] %s317_s26 }
  0x17   : > { %s330_s28 = sshll.u32 %s1836_s27, 4  ;;  %s1665_s29 = scalar_lea.vmem %s305_s23, 2048  ;;  %s331_s28 = int_to_ptr.vmem [resolvable:$true] %s330_s28 }
  0x18   : > { %p1656_p11 = pneg %p1948_p10  ;;  %p1666_p12 = scmp.ne.s32.totalorder %s305_s23, %s1665_s29 }
  0x19   : > { %p1673_p3 = scmp.lt.s32.totalorder %s305_s23, %s305_s23  ;;  %p1674_p5 = scmp.lt.s32.totalorder %s1665_s29, %s1665_s29 }
  0x1a   : > { %p1668_p13 = pnand %p1666_p12, %p1656_p11 }
  0x1b   : > { %p1675_p7 = por %p1674_p5, %p1673_p3 }
  0x1c   : > { %p1669_p0 = pneg %p1668_p13 }
  0x1e   : > { %p1676_p9 = pnand %p1675_p7, %p1669_p0 }
  0x20   : > { %1679 = shalt.err (!%p1676_p9)
}
  0x21   : > { %s1837_s30 = smov 128   ;;  %s1838_s11 = smov 8  }
  0x22   : > { %s2220_s5 = sld [smem:[#allocation17_spill]]  ;;  %s1691_s22 = scalar_lea.vmem %s318_s26, 2048 }
  0x23   : > { %p1692_p1 = scmp.ne.s32.totalorder %s318_s26, %s1691_s22  ;;  %p1699_p2 = scmp.lt.s32.totalorder %s318_s26, %s318_s26 }
  0x24   : > { %p1700_p6 = scmp.lt.s32.totalorder %s1691_s22, %s1691_s22 }
  0x25   : > { %p1694_p12 = pnand %p1692_p1, %p1656_p11 }
  0x26   : > { %p1701_p3 = por %p1700_p6, %p1699_p2 }
  0x27   : > { %p1695_p13 = pneg %p1694_p12 }
  0x28   : > { %1500 = dma.hbm_to_vmem [thread:$0]  (!%p1948_p10), %s2220_s5, 2048, %s305_s23, [#allocation6], %s1837_s30, %s1837_s30, %s1838_s11  }
  0x29   : > { %p1702_p0 = pnand %p1701_p3, %p1695_p13 }
  0x2b   : > { %1705 = shalt.err (!%p1702_p0)
}
  0x2c   : > { %s2221_s6 = sld [smem:[#allocation18_spill]]  ;;  %s1717_s23 = scalar_lea.vmem %s331_s28, 2048 }
  0x2d   : > { %p1718_p5 = scmp.ne.s32.totalorder %s331_s28, %s1717_s23  ;;  %p1725_p9 = scmp.lt.s32.totalorder %s331_s28, %s331_s28 }
  0x2e   : > { %p1726_p12 = scmp.lt.s32.totalorder %s1717_s23, %s1717_s23 }
  0x2f   : > { %p1720_p7 = pnand %p1718_p5, %p1656_p11 }
  0x30   : > { %p1727_p4 = por %p1726_p12, %p1725_p9 }
  0x31   : > { %p1721_p1 = pneg %p1720_p7 }
  0x32   : > { %1503 = dma.hbm_to_vmem [thread:$0]  (!%p1948_p10), %s2221_s6, 2048, %s318_s26, [#allocation6], %s1837_s30, %s1837_s30, %s1838_s11  }
  0x33   : > { %p1728_p2 = pnand %p1727_p4, %p1721_p1 }
  0x35   : > { %1731 = shalt.err (!%p1728_p2)
}
  0x36   : > { %s2222_s7 = sld [smem:[#allocation19_spill]]  ;;  %s1979_s26 = sadd.s32 1, %s1832_s16  }
  0x37   : > { %s110_s18 = ssub.s32 %s1832_s16, %s1979_s26  ;;  %s113_s24 = sadd.s32 1, %s1828_s15 }
  0x38   : > { %p111_p4 = scmp.eq.s32.totalorder %s110_s18, 0  ;;  %p120_p6 = scmp.ne.s32.totalorder %s1828_s15, %s1824_s14 }
  0x39   : > { %p121_p11 = scmp.eq.s32.totalorder %s1832_s16, 0  ;;  %p1518_p13 = scmp.lt.s32.totalorder %s1832_s16, 3 }
  0x3a   : > { %s1989_s22 = scalar_select %p111_p4, %s1828_s15, %s113_s24  }
  0x3b   : > { %p122_p3 = por %p121_p11, %p120_p6  ;;  %p2224_p0 = scmp.eq.s32.totalorder %s1921_s17, 2 }
  0x3c   : > { %1506 = dma.hbm_to_vmem [thread:$0]  (!%p1948_p10), %s2222_s7, 2048, %s331_s28, [#allocation9], %s1837_s30, %s1837_s30, %s1838_s11  }
  0x3d   : > { %2223 = sst [smem:[#allocation16_spill]] %s1989_s22  ;;  %p1993_p5 = por %p2224_p0, %p120_p6 }
  0x3e   : > { %s371_s27 = sand.u32 1, %s1828_s15   ;;  %s1449_s23 = sshll.u32 %s1832_s16, 8 }
  0x3f   : > { %s2225_s25 = scalar_select %p1993_p5, 1, 0 }
  0x40   : > { %s1361_s28 = sshll.u32 %s371_s27, 4  ;;  %s2002_s29 = scalar_lea.hbm %s2199_s3, %s1449_s23 }
  0x41   : > { %s375_s12 = scalar_lea.vmem [#allocation2], %s1361_s28  ;;  %p2004_p10 = pnand %p1518_p13, %p122_p3 }
  0x42   : > { %s383_s18 = sshll.u32 %s375_s12, 4  ;;  %s372_s5 = scalar_lea.sflag [#allocation3], %s371_s27  ;;  %s384_s18 = int_to_ptr.vmem [resolvable:$true] %s383_s18 }
  0x43   : > { %s1732_s6 = scalar_lea.hbm %s2002_s29, 256  ;;  %p1734_p1 = pneg %p2004_p10 }
  0x44   : > { %p1733_p7 = scmp.ne.s32.totalorder %s2002_s29, %s1732_s6  ;;  %s1737_s11 = scalar_lea.hbm %s2199_s3, 768 }
  0x45   : > { %p1738_p2 = scmp.lt.s32.totalorder %s2002_s29, %s2199_s3  ;;  %p1739_p4 = scmp.lt.s32.totalorder %s1737_s11, %s1732_s6 }
  0x46   : > { %p1735_p9 = pnand %p1734_p1, %p1733_p7 }
  0x47   : > { %p1740_p6 = por %p1739_p4, %p1738_p2 }
  0x48   : > { %p1736_p12 = pneg %p1735_p9 }
  0x4a   : > { %p1741_p11 = pnand %p1740_p6, %p1736_p12 }
  0x4c   : > { %1744 = shalt.err (!%p1741_p11)
}
  0x4d   : > { %s1745_s12 = scalar_lea.vmem %s384_s18, 256  ;;  %s1839_s27 = smov [#allocation2]  }
  0x4e   : > { %p1746_p13 = scmp.ne.s32.totalorder %s384_s18, %s1745_s12  ;;  %s1750_s22 = sshll.u32 %s1839_s27, 4  ;;  %s1751_s22 = int_to_ptr.vmem [resolvable:$false] %s1750_s22 }
  0x4f   : > { %s1752_s15 = scalar_lea.vmem %s1751_s22, 512  ;;  %p1753_p7 = scmp.lt.s32.totalorder %s384_s18, %s1751_s22 }
  0x50   : > { %p1748_p3 = pnand %p1746_p13, %p1734_p1  ;;  %p1754_p9 = scmp.lt.s32.totalorder %s1752_s15, %s1745_s12 }
  0x52   : > { %p1749_p0 = pneg %p1748_p3  ;;  %p1755_p5 = por %p1754_p9, %p1753_p7 }
  0x54   : > { %p1756_p8 = pnand %p1755_p5, %p1749_p0 }
  0x56   : > { %1759 = shalt.err (!%p1756_p8)
}
  0x57   : > { %1510 = dma.hbm_to_vmem [thread:$0]  (!%p2004_p10), %s2002_s29, 256, %s384_s18, %s372_s5  }
  0x58   : > { %p2227_p12 = scmp.ne.s32.totalorder %s2218_s21, 0 }
  0x59   : > { %s2025_s6 = sand.u32 (!%p2227_p12), 1, %s1824_s14   ;;  %p2228_p1 = scmp.ne.s32.totalorder (!%p2227_p12), %s2216_s19, 0 }
  0x5a   : > { %392 = sbr.rel (%p2227_p12) target bundleno = 1581 (0x62d), region = 60  ;;  %s1365_s7 = sshll.u32 (!%p2227_p12), %s2025_s6, 4 }
  0x5b   : > { %s395_s23 = scalar_lea.sflag (!%p2227_p12), [#allocation3], %s2025_s6  ;;  %s2029_s22 = scalar_lea.vmem (!%p2227_p12), [#allocation2], %s1365_s7 }
  0x5f   : > { %1803 = dma.done.wait (%p2228_p1), %s395_s23, 256  }
  0x60   : > { %1805 = vsyncadd (%p2228_p1), %s395_s23, 4294967040  ;;  %p2229_p8 = scmp.eq.s32.totalorder %s1921_s17, 0 }
  0x62   : > { %1807 = dma.done.wait (%p2229_p8), [#allocation6], 4096   ;;  %p2230_p5 = pmov %p2229_p8 }
  0x64   : > { %1809 = vsyncadd (%p2230_p5), [#allocation6], 4294963200  ;;  %p2231_p10 = pmov %p2230_p5 }
  0x65   : > { %p2232_p2 = pmov %p2230_p5 }
  0x66   : > { %1811 = dma.done.wait (%p2231_p10), [#allocation9], 2048  }
  0x67   : > { %1813 = vsyncadd (%p2232_p2), [#allocation9], 4294965248  ;;  %p459_p4 = scmp.lt.s32.totalorder %s1921_s17, 2  ;;  %v1840_v0 = vmov 0   ;;  %v1841_v1 = vmov 0.0   ;;  %vm1842_vm0 = vmmov 0   ;;  %v473_v11 = vlaneseq }
  0x68   : > { %1564 = vset.pattern.permute.xlu0 %v1840_v0  ;;  %1461 = vmatprep.subr.bf16.mxu0 %v1841_v1  ;;  %v1566_v3 = vld [vmem:[%s2200_s4 + $0x38] sm:$0xff]   ;;  %v1567_v4 = vld [vmem:[%s2200_s4 + $0x30] sm:$0xff]   ;;  %v1568_v5 = vld [vmem:[%s2200_s4 + $0x28] sm:$0xff]   ;;  %v1843_v14 = vmov 1.0|1.0   ;;  %s1206_s28 = scalar_lea.sflag [#allocation4], %s2025_s6 }
  0x69   : > { %s460_s5 = scalar_select %p459_p4, %s1921_s17, 2  ;;  %1565 = vset.pattern.permute.xlu1 %v1840_v0  ;;  %720 = vmatprep.mubr.bf16.mxu1 %v1840_v0  ;;  %v1569_v6 = vld [vmem:[%s2200_s4 + $0x20] sm:$0xff]   ;;  %v1570_v7 = vld [vmem:[%s2200_s4 + $0x18] sm:$0xff]   ;;  %v1571_v8 = vld [vmem:[%s2200_s4 + $0x10] sm:$0xff]   ;;  %v2079_v12 = vand.u32 127, %v473_v11 }
  0x6a   : > { %1477 = vmatprep.mubr.msk.bf16.mxu0 %vm1842_vm0, %v1841_v1  ;;  %1462 = vmatpush3.bf16.msra.mxu0 %v1566_v3  ;;  %v1572_v9 = vld [vmem:[%s2200_s4 + $0x8] sm:$0xff]   ;;  %v1573_v10 = vld [vmem:[%s2200_s4] sm:$0xff]   ;;  %v1574_v15 = vld [vmem:[#allocation7 + $0x70] ss:$8 sps:$4 sm:$0xff]   ;;  %p2233_p11 = scmp.ne.s32.totalorder %s2225_s25, 0  ;;  %s1844_s27 = smov [#allocation10]  }
  0x6b   : > { %s2048_s15 = sshll.u32 %s460_s5, 3  ;;  %1463 = vmatprep.subr.bf16.mxu0 %v1841_v1  ;;  %v1576_v16 = vld [vmem:[#allocation7 + $0x74] ss:$8 sps:$4 sm:$0xff]   ;;  %v1579_v18 = vld [vmem:[#allocation7 + $0x64] ss:$8 sps:$4 sm:$0xff]   ;;  %s1369_s5 = sshll.u32 %s2025_s6, 3 }
  0x6c   : > { %s462_s29 = scalar_lea.vmem %s2196_s0, %s2048_s15  ;;  %s466_s12 = scalar_lea.vmem %s2197_s1, %s2048_s15  ;;  %v1577_v19 = vld [vmem:[#allocation7 + $0x60] ss:$8 sps:$4 sm:$0xff]   ;;  %v1582_v20 = vld [vmem:[#allocation7 + $0x54] ss:$8 sps:$4 sm:$0xff]   ;;  %v1580_v21 = vld [vmem:[#allocation7 + $0x50] ss:$8 sps:$4 sm:$0xff]  }
  0x6d   : > { %v472_v2 = vld [vmem:[%s462_s29] sm:$0xff]  ;;  %v1588_v24 = vld [vmem:[#allocation7 + $0x34] ss:$8 sps:$4 sm:$0xff]   ;;  %v1586_v25 = vld [vmem:[#allocation7 + $0x30] ss:$8 sps:$4 sm:$0xff]   ;;  %s470_s23 = scalar_lea.vmem %s2198_s2, %s2048_s15  ;;  %s1451_s29 = sshll.u32 %s1921_s17, 7 }
  0x6e   : > { %476 = vperm.xlu0 %1564, %v472_v2   ;;  %1464 = vmatpush3.bf16.msra.mxu0 %v1567_v4  ;;  %v585_v17 = vld [vmem:[%s466_s12] sm:$0xff]  ;;  %v1594_v32 = vld [vmem:[#allocation7 + $0x14] ss:$8 sps:$4 sm:$0xff]   ;;  %v1592_v33 = vld [vmem:[#allocation7 + $0x10] ss:$8 sps:$4 sm:$0xff]   ;;  %s458_s18 = scalar_lea.vmem [#allocation10], %s1369_s5  ;;  %s1218_s11 = scalar_lea.hbm %s2206_s10, %s1451_s29 }
  0x6f   : > { %1465 = vmatprep.subr.bf16.mxu0 %v1841_v1  ;;  %587 = vperm.xlu1 %1565, %v585_v17   ;;  %v1585_v22 = vld [vmem:[#allocation7 + $0x44] ss:$8 sps:$4 sm:$0xff]   ;;  %v1583_v23 = vld [vmem:[#allocation7 + $0x40] ss:$8 sps:$4 sm:$0xff]   ;;  %v1598_v37 = vld [vmem:[#allocation5 + $0x74] ss:$8 sps:$4 sm:$0xff]  }
  0x70   : > { %v1591_v26 = vld [vmem:[#allocation7 + $0x24] ss:$8 sps:$4 sm:$0xff]   ;;  %v1589_v27 = vld [vmem:[#allocation7 + $0x20] ss:$8 sps:$4 sm:$0xff]   ;;  %v1600_v38 = vld [vmem:[#allocation5 + $0x70] ss:$8 sps:$4 sm:$0xff]   ;;  %688 = vmatprep.subr.bf16.mxu1 %v1598_v37 }
  0x71   : > { %v1597_v34 = vld [vmem:[#allocation7 + $0x4] ss:$8 sps:$4 sm:$0xff]   ;;  %v1595_v35 = vld [vmem:[#allocation7] ss:$8 sps:$4 sm:$0xff]   ;;  %689 = vmatpush1.bf16.msra.mxu1 %v1600_v38  ;;  %v1604_v41 = vld [vmem:[#allocation5 + $0x54] ss:$8 sps:$4 sm:$0xff]  }
  0x72   : > { %1466 = vmatpush3.bf16.msra.mxu0 %v1568_v5  ;;  %v729_v36 = vld [vmem:[%s470_s23] sm:$0xff]  ;;  %v1606_v42 = vld [vmem:[#allocation5 + $0x50] ss:$8 sps:$4 sm:$0xff]   ;;  %v1610_v45 = vld [vmem:[#allocation5 + $0x34] ss:$8 sps:$4 sm:$0xff]   ;;  %s1764_s7 = sshll.u32 %s1844_s27, 4  ;;  %s1765_s7 = int_to_ptr.vmem [resolvable:$false] %s1764_s7 }
  0x73   : > { %1467 = vmatprep.subr.bf16.mxu0 %v1841_v1  ;;  %v1601_v39 = vld [vmem:[#allocation5 + $0x64] ss:$8 sps:$4 sm:$0xff]   ;;  %v1603_v40 = vld [vmem:[#allocation5 + $0x60] ss:$8 sps:$4 sm:$0xff]   ;;  %v1612_v46 = vld [vmem:[#allocation5 + $0x30] ss:$8 sps:$4 sm:$0xff]  }
  0x74   : > { %690 = vmatprep.subr.bf16.mxu1 %v1601_v39  ;;  %v1607_v43 = vld [vmem:[#allocation5 + $0x44] ss:$8 sps:$4 sm:$0xff]   ;;  %v1609_v44 = vld [vmem:[#allocation5 + $0x40] ss:$8 sps:$4 sm:$0xff]   ;;  %v1616_v49 = vld [vmem:[#allocation5 + $0x14] ss:$8 sps:$4 sm:$0xff]  }
  0x75   : > { %691 = vmatpush1.bf16.msra.mxu1 %v1603_v40  ;;  %v1613_v47 = vld [vmem:[#allocation5 + $0x24] ss:$8 sps:$4 sm:$0xff]   ;;  %v1615_v48 = vld [vmem:[#allocation5 + $0x20] ss:$8 sps:$4 sm:$0xff]   ;;  %v1618_v50 = vld [vmem:[#allocation5 + $0x10] ss:$8 sps:$4 sm:$0xff]  }
  0x76   : > { %1468 = vmatpush3.bf16.msra.mxu0 %v1569_v6  ;;  %692 = vmatprep.subr.bf16.mxu1 %v1604_v41  ;;  %v1619_v51 = vld [vmem:[#allocation5 + $0x4] ss:$8 sps:$4 sm:$0xff]   ;;  %v1621_v53 = vld [vmem:[#allocation5] ss:$8 sps:$4 sm:$0xff]   ;;  %v1624_v54 = vld [vmem:[#allocation8 + $0x74] ss:$8 sps:$4 sm:$0xff]  }
  0x77   : > { %1469 = vmatprep.subr.bf16.mxu0 %v1841_v1  ;;  %v1622_v55 = vld [vmem:[#allocation8 + $0x70] ss:$8 sps:$4 sm:$0xff]   ;;  %v1627_v56 = vld [vmem:[#allocation8 + $0x64] ss:$8 sps:$4 sm:$0xff]   ;;  %v1625_v57 = vld [vmem:[#allocation8 + $0x60] ss:$8 sps:$4 sm:$0xff]  }
  0x78   : > { %v1630_v63 = vld [vmem:[#allocation8 + $0x54] ss:$8 sps:$4 sm:$0xff]   ;;  %v1631_v2 = vld [vmem:[#allocation8 + $0x40] ss:$8 sps:$4 sm:$0xff]   ;;  %v1634_v4 = vld [vmem:[#allocation8 + $0x30] ss:$8 sps:$4 sm:$0xff]  }
  0x79   : > { %693 = vmatpush1.bf16.msra.mxu1 %v1606_v42  ;;  %v1636_v3 = vld [vmem:[#allocation8 + $0x34] ss:$8 sps:$4 sm:$0xff]   ;;  %v1639_v5 = vld [vmem:[#allocation8 + $0x24] ss:$8 sps:$4 sm:$0xff]   ;;  %v1637_v6 = vld [vmem:[#allocation8 + $0x20] ss:$8 sps:$4 sm:$0xff]  }
  0x7a   : > { %1470 = vmatpush3.bf16.msra.mxu0 %v1570_v7  ;;  %694 = vmatprep.subr.bf16.mxu1 %v1607_v43  ;;  %v1642_v7 = vld [vmem:[#allocation8 + $0x14] ss:$8 sps:$4 sm:$0xff]   ;;  %s1766_s17 = scalar_lea.vmem %s1765_s7, 256 }
  0x7b   : > { %1471 = vmatprep.subr.bf16.mxu0 %v1841_v1  ;;  %v1096_v43 = vld [vmem:[%s2029_s22] sm:$0xff] }
  0x7d   : > { %695 = vmatpush1.bf16.msra.mxu1 %v1609_v44  ;;  %v1097_v44 = vld [vmem:[%s2029_s22 + $0x8] sm:$0xff]  ;;  %s1220_s22 = sshll.u32 %s458_s18, 4  ;;  %s1221_s22 = int_to_ptr.vmem [resolvable:$true] %s1220_s22 }
  0x7e   : > { %1472 = vmatpush3.bf16.msra.mxu0 %v1571_v8  ;;  %696 = vmatprep.subr.bf16.mxu1 %v1610_v45  ;;  %v1640_v8 = vld [vmem:[#allocation8 + $0x10] ss:$8 sps:$4 sm:$0xff]   ;;  %s1760_s12 = scalar_lea.vmem %s1221_s22, 128  ;;  %p1767_p0 = scmp.lt.s32.totalorder %s1221_s22, %s1765_s7 }
  0x7f   : > { %1473 = vmatprep.subr.bf16.mxu0 %v1841_v1  ;;  %p1761_p6 = scmp.ne.s32.totalorder %s1221_s22, %s1760_s12  ;;  %p1768_p7 = scmp.lt.s32.totalorder %s1766_s17, %s1760_s12 }
  0x81   : > { %697 = vmatpush1.bf16.msra.mxu1 %v1612_v46  ;;  %v1102_v46 = vadd.f32 %v1097_v44, %v1096_v43  ;;  %p1762_p13 = pnand %p1761_p6, %p2233_p11  ;;  %p1769_p9 = por %p1768_p7, %p1767_p0 }
  0x82   : > { %1474 = vmatpush3.bf16.msra.mxu0 %v1572_v9  ;;  %698 = vmatprep.subr.bf16.mxu1 %v1613_v47  ;;  %v1645_v9 = vld [vmem:[#allocation8 + $0x4] ss:$8 sps:$4 sm:$0xff]  }
  0x83   : > { %1475 = vmatprep.subr.bf16.mxu0 %v1841_v1  ;;  %v1628_v1 = vld [vmem:[#allocation8 + $0x50] ss:$8 sps:$4 sm:$0xff]   ;;  %p1763_p3 = pneg %p1762_p13 }
  0x85   : > { %699 = vmatpush1.bf16.msra.mxu1 %v1615_v48  ;;  %p1770_p12 = pnand %p1769_p9, %p1763_p3 }
  0x86   : > { %1476 = vmatpush3.bf16.msra.mxu0 %v1573_v10  ;;  %700 = vmatprep.subr.bf16.mxu1 %v1616_v49  ;;  %v1643_v10 = vld [vmem:[#allocation8] ss:$8 sps:$4 sm:$0xff]  }
  0x87   : > { %832 = vmatprep.subr.bf16.mxu0 %v1576_v16 }
  0x89   : > { %701 = vmatpush1.bf16.msra.mxu1 %v1618_v50 }
  0x8a   : > { %702 = vmatprep.subr.bf16.mxu1 %v1619_v51 }
  0x8d   : > { %703 = vmatpush1.bf16.msra.mxu1 %v1621_v53 }
  0x8e   : > { %1006 = vmatprep.subr.bf16.mxu1 %v1624_v54 }
  0xe9   : > { %v477_v13 = vpop.permute.xlu0 %476 }
  0xea   : > { %vm478_vm1 = vcmp.eq.s32.totalorder %v477_v13, %v2079_v12  ;;  %v588_v52 = vpop.permute.xlu1 %587 }
  0xeb   : > { %vm1381_vm2 = vmpackc.low %vm478_vm1, %vm478_vm1  ;;  %vm589_vm3 = vcmp.eq.s32.totalorder %v588_v52, %v2079_v12 }
  0xec   : > { %1478 = vmatmul.mubr.msk.bf16.vlgmr.msra.gmra.mxu0 %vm1381_vm2, %v1843_v14  ;;  %vm1399_vm4 = vmpackc.low %vm589_vm3, %vm589_vm3 }
  0xed   : > { %864 = vmatprep.mubr.bf16.mxu0 %v1840_v0  ;;  %833 = vmatpush1.bf16.msra.mxu0 %v1574_v15 }
  0xee   : > { %834 = vmatprep.subr.bf16.mxu0 %v1579_v18  ;;  %1400 = vmatmul.mubr.msk.bf16.vlgmr.msra.gmra.mxu1 %vm1399_vm4, %v1843_v14 }
  0xef   : > { %1007 = vmatpush1.bf16.msra.mxu1 %v1622_v55  ;;  %1038 = vmatprep.mubr.bf16.mxu1 %v1840_v0  ;;  %v1633_v0 = vld [vmem:[#allocation8 + $0x44] ss:$8 sps:$4 sm:$0xff]  }
  0xf0   : > { %1008 = vmatprep.subr.bf16.mxu1 %v1627_v56 }
  0xf1   : > { %835 = vmatpush1.bf16.msra.mxu0 %v1577_v19 }
  0xf2   : > { %836 = vmatprep.subr.bf16.mxu0 %v1582_v20  ;;  %v1419_v20 = vld [vmem:[%s2204_s8] ss:$0 sm:$0xff] }
  0xf3   : > { %1009 = vmatpush1.bf16.msra.mxu1 %v1625_v57 }
  0xf4   : > { %1010 = vmatprep.subr.bf16.mxu1 %v1630_v63 }
  0xf5   : > { %837 = vmatpush1.bf16.msra.mxu0 %v1580_v21 }
  0xf6   : > { %838 = vmatprep.subr.bf16.mxu0 %v1585_v22  ;;  %v1420_v22 = vld [vmem:[%s2204_s8 + $0x1] ss:$0 sm:$0xff] }
  0xf7   : > { %1011 = vmatpush1.bf16.msra.mxu1 %v1628_v1 }
  0xf8   : > { %1012 = vmatprep.subr.bf16.mxu1 %v1633_v0 }
  0xf9   : > { %839 = vmatpush1.bf16.msra.mxu0 %v1583_v23 }
  0xfa   : > { %840 = vmatprep.subr.bf16.mxu0 %v1588_v24 }
  0xfb   : > { %1013 = vmatpush1.bf16.msra.mxu1 %v1631_v2 }
  0xfc   : > { %1014 = vmatprep.subr.bf16.mxu1 %v1636_v3  ;;  %v1437_v3 = vld [vmem:[%s2205_s9 + $0x1] ss:$8 sm:$0x3] }
  0xfd   : > { %841 = vmatpush1.bf16.msra.mxu0 %v1586_v25 }
  0xfe   : > { %842 = vmatprep.subr.bf16.mxu0 %v1591_v26 }
  0xff   : > { %1015 = vmatpush1.bf16.msra.mxu1 %v1634_v4 }
 0x100   : > { %1016 = vmatprep.subr.bf16.mxu1 %v1639_v5  ;;  %v1439_v5 = vld [vmem:[%s2205_s9 + $0x3] ss:$8 sm:$0x3] }
 0x101   : > { %843 = vmatpush1.bf16.msra.mxu0 %v1589_v27 }
 0x102   : > { %844 = vmatprep.subr.bf16.mxu0 %v1594_v32  ;;  %v914_v32 = vld [vmem:[%s2205_s9] ss:$8 sm:$0x3] }
 0x103   : > { %1017 = vmatpush1.bf16.msra.mxu1 %v1637_v6  ;;  %v1438_v6 = vld [vmem:[%s2205_s9 + $0x2] ss:$8 sm:$0x3] }
 0x104   : > { %1018 = vmatprep.subr.bf16.mxu1 %v1642_v7 }
 0x105   : > { %845 = vmatpush1.bf16.msra.mxu0 %v1592_v33 }
 0x106   : > { %846 = vmatprep.subr.bf16.mxu0 %v1597_v34 }
 0x107   : > { %1019 = vmatpush1.bf16.msra.mxu1 %v1640_v8 }
 0x108   : > { %1020 = vmatprep.subr.bf16.mxu1 %v1645_v9 }
 0x109   : > { %847 = vmatpush1.bf16.msra.mxu0 %v1595_v35 }
 0x10b   : > { %1021 = vmatpush1.bf16.msra.mxu1 %v1643_v10 }
 0x1ac   : > { %v2088_v28 = vpop.f32.mrf.mxu0 }
 0x1ad   : > { %875 = vadd.xlane.f32.xlu0 %v2088_v28 }
 0x1ae   : > { %v1479_v29 = vpop.f32.mrf.mxu0 }
 0x1b0   : > { %v582_v30 = vpop.f32.mrf.mxu0 }
 0x1b1   : > { %v917_v30 = vshrl.u32 %v473_v11, 7 }
 0x1b2   : > { %v1480_v31 = vpop.f32.mrf.mxu0 }
 0x1b3   : > { %v2116_v31 = vsub.s32 0, %v917_v30  ;;  %v2121_v33 = vsub.s32 1, %v917_v30 }
 0x1b5   : > { %v919_v34 = vrot.slane %v914_v32, %v2116_v31  ;;  %v923_v35 = vrot.slane %v914_v32, %v2121_v33  ;;  %v1074_v9 = vrot.slane %v1437_v3, %v2116_v31  ;;  %v1078_v10 = vrot.slane %v1437_v3, %v2121_v33 }
 0x1c3   : > { %731 = vperm.xlu0 %1564, %v729_v36  }
 0x236   : > { %v876_v58 = vpop.xlane.xlu0 %875 }
 0x237   : > { %v878_v59 = vmul.f32 0.0078125, %v876_v58 }
 0x239   : > { %v879_v60 = vsub.f32 %v2088_v28, %v878_v59 }
 0x23b   : > { %v880_v61 = vmul.f32 %v879_v60, %v879_v60 }
 0x23d   : > { %881 = vadd.xlane.f32.xlu1 %v880_v61 }
 0x23e   : > { %v732_v62 = vpop.permute.xlu0 %731 }
 0x23f   : > { %vm733_vm5 = vcmp.eq.s32.totalorder %v732_v62, %v2079_v12  ;;  %v2101_v12 = vpop.f32.mrf.mxu1 }
 0x240   : > { %vm1417_vm6 = vmpackc.low %vm733_vm5, %vm733_vm5 }
 0x241   : > { %1418 = vmatmul.mubr.msk.bf16.vlgmr.msra.gmra.mxu0 %vm1417_vm6, %v1843_v14  ;;  %v2103_v13 = vpop.f32.mrf.mxu1 }
 0x243   : > { %v726_v14 = vpop.f32.mrf.mxu1 }
 0x244   : > { %v1440_v14 = vld [vmem:[%s2205_s9 + $0x4] ss:$8 sm:$0x3] }
 0x245   : > { %v727_v15 = vpop.f32.mrf.mxu1 }
 0x246   : > { %v1122_v15 = vrot.slane %v1439_v5, %v2116_v31 }
 0x2c6   : > { %v882_v16 = vpop.xlane.xlu1 %881 }
 0x2c7   : > { %v883_v17 = vmul.f32 0.0078125, %v882_v16  ;;  %v1126_v16 = vrot.slane %v1439_v5, %v2121_v33 }
 0x2c9   : > { %v884_v18 = vadd.f32 1e-12, %v883_v17 }
 0x2cb   : > { %1646 = vrsqrt.f32 %v884_v18  ;;  %v1087_v18 = vrot.slane %v1438_v6, %v2116_v31 }
 0x2d8   : > { %v1647_v19 = vpop.eup %1646 }
 0x2d9   : > { %v886_v21 = vmul.f32 %v1647_v19, %v879_v60  ;;  %v1091_v19 = vrot.slane %v1438_v6, %v2121_v33 }
 0x2db   : > { %v891_v23 = vmul.f32 %v1419_v20, %v886_v21  ;;  %v1135_v20 = vrot.slane %v1440_v14, %v2116_v31  ;;  %v1139_v21 = vrot.slane %v1440_v14, %v2121_v33 }
 0x2dd   : > { %v896_v24 = vadd.f32 %v1420_v22, %v891_v23 }
 0x2df   : > { %v897_v25 = vpack.c.bf16 %v896_v24, %v896_v24 }
 0x2e1   : > { %1039 = vmatmul.mubr.bf16.vlgmr.msra.gmra.mxu1 %v897_v25 }
 0x301   : > { %v2111_v26 = vpop.f32.mrf.mxu0 }
 0x303   : > { %v2113_v27 = vpop.f32.mrf.mxu0 }
 0x305   : > { %v870_v28 = vpop.f32.mrf.mxu0 }
 0x307   : > { %v871_v29 = vpop.f32.mrf.mxu0 }
 0x3a1   : > { %v1040_v36 = vpop.f32.mrf.mxu1 }
 0x3a2   : > { %v1041_v37 = vadd.f32 %v1040_v36, %v919_v34 }
 0x3a3   : > { %v1042_v38 = vpop.f32.mrf.mxu1 }
 0x3a4   : > { %v1043_v39 = vadd.f32 %v1042_v38, %v923_v35  ;;  %v1047_v41 = vmax.f32 %v1041_v37, 0.0 }
 0x3a5   : > { %v1044_v40 = vpop.f32.mrf.mxu1 }
 0x3a6   : > { %v1048_v42 = vmax.f32 %v1043_v39, 0.0 }
 0x3a7   : > { %v1045_v11 = vpop.f32.mrf.mxu1 }
 0x3a8   : > { %v1053_v45 = vadd.f32 %v1048_v42, %v1047_v41 }
 0x3aa   : > { %1054 = vadd.xlane.f32.xlu1 %v1053_v45 }
 0x3ae   : > { %1103 = vadd.xlane.f32.xlu1 %v1102_v46 }
 0x433   : > { %v1055_v47 = vpop.xlane.xlu1 %1054 }
 0x434   : > { %v1057_v48 = vmul.f32 0.00390625, %v1055_v47 }
 0x436   : > { %v1058_v49 = vsub.f32 %v1047_v41, %v1057_v48  ;;  %v1059_v50 = vsub.f32 %v1048_v42, %v1057_v48 }
 0x437   : > { %v1104_v51 = vpop.xlane.xlu1 %1103 }
 0x438   : > { %v1105_v52 = vmul.f32 0.00390625, %v1104_v51  ;;  %v1060_v53 = vmul.f32 %v1058_v49, %v1058_v49  ;;  %v1061_v54 = vmul.f32 %v1059_v50, %v1059_v50 }
 0x43a   : > { %v1106_v55 = vsub.f32 %v1096_v43, %v1105_v52  ;;  %v1107_v56 = vsub.f32 %v1097_v44, %v1105_v52  ;;  %v1062_v57 = vadd.f32 %v1061_v54, %v1060_v53 }
 0x43c   : > { %1063 = vadd.xlane.f32.xlu1 %v1062_v57  ;;  %v1108_v58 = vmul.f32 %v1106_v55, %v1106_v55  ;;  %v1109_v59 = vmul.f32 %v1107_v56, %v1107_v56 }
 0x43e   : > { %v1110_v60 = vadd.f32 %v1109_v59, %v1108_v58 }
 0x440   : > { %1111 = vadd.xlane.f32.xlu1 %v1110_v60 }
 0x4c5   : > { %v1064_v61 = vpop.xlane.xlu1 %1063 }
 0x4c6   : > { %v1065_v62 = vmul.f32 0.00390625, %v1064_v61 }
 0x4c8   : > { %v1066_v63 = vadd.f32 1e-12, %v1065_v62 }
 0x4c9   : > { %v1112_v1 = vpop.xlane.xlu1 %1111 }
 0x4ca   : > { %1648 = vrsqrt.f32 %v1066_v63  ;;  %v1113_v2 = vmul.f32 0.00390625, %v1112_v1 }
 0x4cc   : > { %v1114_v0 = vadd.f32 1e-12, %v1113_v2 }
 0x4ce   : > { %1650 = vrsqrt.f32 %v1114_v0 }
 0x4d7   : > { %v1649_v4 = vpop.eup %1648 }
 0x4d8   : > { %v1068_v7 = vmul.f32 %v1649_v4, %v1058_v49  ;;  %v1069_v8 = vmul.f32 %v1649_v4, %v1059_v50 }
 0x4da   : > { %v1081_v22 = vmul.f32 %v1074_v9, %v1068_v7  ;;  %v1082_v23 = vmul.f32 %v1078_v10, %v1069_v8 }
 0x4db   : > { %v1651_v17 = vpop.eup %1650 }
 0x4dc   : > { %v1116_v24 = vmul.f32 %v1651_v17, %v1106_v55  ;;  %v1117_v25 = vmul.f32 %v1651_v17, %v1107_v56  ;;  %v1094_v30 = vadd.f32 %v1087_v18, %v1081_v22  ;;  %v1095_v32 = vadd.f32 %v1091_v19, %v1082_v23 }
 0x4de   : > { %v1129_v28 = vmul.f32 %v1122_v15, %v1116_v24  ;;  %v1130_v29 = vmul.f32 %v1126_v16, %v1117_v25 }
 0x4e0   : > { %v1142_v34 = vadd.f32 %v1135_v20, %v1129_v28  ;;  %v1143_v35 = vadd.f32 %v1139_v21, %v1130_v29 }
 0x4e2   : > { %v1144_v36 = vadd.f32 %v1142_v34, %v1094_v30  ;;  %v1145_v37 = vadd.f32 %v1143_v35, %v1095_v32 }
 0x4e4   : > { %v1146_v38 = vadd.f32 %v1144_v36, %v2101_v12  ;;  %v1147_v39 = vadd.f32 %v1145_v37, %v2103_v13  ;;  %v1441_v13 = vld [vmem:[%s2205_s9 + $0x5] ss:$8 sm:$0x3] }
 0x4e5   : > { %v1178_v51 = vrot.slane %v1441_v13, %v2121_v33 }
 0x4e6   : > { %v1148_v40 = vadd.f32 %v1146_v38, %v2111_v26  ;;  %v1149_v41 = vadd.f32 %v1147_v39, %v2113_v27  ;;  %v1442_v26 = vld [vmem:[%s2205_s9 + $0x6] ss:$8 sm:$0x3]  ;;  %v1174_v27 = vrot.slane %v1441_v13, %v2116_v31 }
 0x4e7   : > { %v1187_v55 = vrot.slane %v1442_v26, %v2116_v31  ;;  %v1191_v56 = vrot.slane %v1442_v26, %v2121_v33 }
 0x4e8   : > { %v1154_v42 = vadd.f32 %v1149_v41, %v1148_v40 }
 0x4ea   : > { %1155 = vadd.xlane.f32.xlu1 %v1154_v42 }
 0x573   : > { %v1156_v11 = vpop.xlane.xlu1 %1155 }
 0x574   : > { %v1157_v43 = vmul.f32 0.00390625, %v1156_v11 }
 0x576   : > { %v1158_v44 = vsub.f32 %v1148_v40, %v1157_v43  ;;  %v1159_v45 = vsub.f32 %v1149_v41, %v1157_v43 }
 0x578   : > { %v1160_v46 = vmul.f32 %v1158_v44, %v1158_v44  ;;  %v1161_v47 = vmul.f32 %v1159_v45, %v1159_v45 }
 0x57a   : > { %v1162_v48 = vadd.f32 %v1161_v47, %v1160_v46 }
 0x57c   : > { %1163 = vadd.xlane.f32.xlu0 %v1162_v48 }
 0x605   : > { %v1164_v49 = vpop.xlane.xlu0 %1163 }
 0x606   : > { %v1165_v12 = vmul.f32 0.00390625, %v1164_v49 }
 0x608   : > { %v1166_v50 = vadd.f32 1e-12, %v1165_v12 }
 0x60a   : > { %1652 = vrsqrt.f32 %v1166_v50 }
 0x617   : > { %v1653_v52 = vpop.eup %1652 }
 0x618   : > { %v1168_v53 = vmul.f32 %v1653_v52, %v1158_v44  ;;  %v1169_v54 = vmul.f32 %v1653_v52, %v1159_v45 }
 0x61a   : > { %v1181_v57 = vmul.f32 %v1174_v27, %v1168_v53  ;;  %v1182_v58 = vmul.f32 %v1178_v51, %v1169_v54 }
 0x61c   : > { %v1194_v59 = vadd.f32 %v1187_v55, %v1181_v57  ;;  %v1195_v60 = vadd.f32 %v1191_v56, %v1182_v58 }
 0x61e   : > { %v1450_v61 = vpack.c.bf16 %v1195_v60, %v1194_v59 }
 0x620   : > { %1204 = vst [vmem:[%s458_s18] sm:$0xff] %v1450_v61 }
 0x621   : > { %1773 = shalt.err (!%p1770_p12)
}
 0x622   : > { %s1774_s23 = scalar_lea.hbm %s1218_s11, 128  ;;  %s1778_s5 = scalar_lea.hbm %s2206_s10, 384 }
 0x623   : > { %p1775_p1 = scmp.ne.s32.totalorder %s1218_s11, %s1774_s23  ;;  %p1779_p10 = scmp.lt.s32.totalorder %s1218_s11, %s2206_s10 }
 0x624   : > { %p1780_p2 = scmp.lt.s32.totalorder %s1778_s5, %s1774_s23 }
 0x625   : > { %p1776_p8 = pnand %p1775_p1, %p2233_p11 }
 0x626   : > { %p1781_p4 = por %p1780_p2, %p1779_p10 }
 0x627   : > { %p1777_p5 = pneg %p1776_p8 }
 0x629   : > { %p1782_p6 = pnand %p1781_p4, %p1777_p5 }
 0x62b   : > { %1785 = shalt.err (!%p1782_p6)
}
 0x62c   : > { %1495 = dma.vmem_to_hbm [thread:$0]  (%p2233_p11), %s1221_s22, 128, %s1218_s11, %s1206_s28  }
 0x62d PF: > { %p1522_p13 = scmp.ge.s32.totalorder %s1832_s16, 2  ;;  %s1232_s29 = sand.u32 1, %s1820_s13  }
 0x62e   : > { %p2234_p3 = scmp.ne.s32.totalorder %s2217_s20, 0  ;;  %s1233_s18 = scalar_lea.sflag [#allocation4], %s1232_s29 }
 0x630   : > { %p1512_p0 = pnand %p1522_p13, %p2234_p3 }
 0x632   : > { %p1513_p7 = pneg %p1512_p0 }
 0x634   : > { %1815 = dma.done.wait (%p1513_p7), %s1233_s18, 128  }
 0x635   : > { %1817 = vsyncadd (%p1513_p7), %s1233_s18, 4294967168  ;;  %s2235_s24 = sld [smem:[#allocation15_spill]]  ;;  %p25_p9 = scmp.ge.s32.totalorder %s1979_s26, 5  }
 0x636   : > { %s2236_s15 = sld [smem:[#allocation16_spill]]  ;;  %s2237_s13 = smov %s1824_s14 }
 0x637   : > { %s2239_s16 = smov %s1979_s26  ;;  %27 = sbr.rel (!%p25_p9) target bundleno = 11 (0xb), region = 132 }
 0x63b   : > { %s2238_s14 = smov %s2235_s24 }
 0x63c   :  { %1238 = vsyncpa [#allocation3], 1 }
 0x63d   :  { %1240 = vsyncpa [#allocation3 + $0x1], 1 }
 0x63e   :  { %1241 = vsyncpa [#allocation6], 1 }
 0x63f   :  { %1242 = vsyncpa [#allocation9], 1 }
 0x640   :  { %1243 = vsyncpa [#allocation4], 1 }
 0x641   :  { %1245 = vsyncpa [#allocation4 + $0x1], 1 }

</bundles_post_ra>
